<compile_context>
chip_gen: v5e
topology: v5e:2x2
jax: 0.10.0
libtpu: 0.0.40
codegen_flags: <defaults>
</compile_context>

<pallas_src>
import functools
import math

import jax
import jax.numpy as jnp
from jax.experimental import pallas as pl
from jax.experimental.pallas import tpu as pltpu

ACT_DTYPE = jnp.bfloat16           # inter-layer activation dtype

# ---------------------------------------------------------------------------
# Pallas kernel 1: tiled matmul with fused scale/shift + activation epilogue.
# ---------------------------------------------------------------------------
def _apply_act(y, activation):
    if activation == "relu":
        return jnp.maximum(y, 0.0)
    if activation == "sigmoid":
        return jax.nn.sigmoid(y)
    return y


def _make_mm_single(activation):
    # Full-K in one shot: no accumulator scratch, no init/finalize pl.when.
    def kernel(a_ref, b_ref, s_ref, t_ref, o_ref):
        y = jnp.dot(a_ref[...], b_ref[...], preferred_element_type=jnp.float32)
        y = y * s_ref[...] + t_ref[...]
        o_ref[...] = _apply_act(y, activation).astype(o_ref.dtype)
    return kernel


def _make_mm_multi(activation):
    def kernel(a_ref, b_ref, s_ref, t_ref, o_ref, acc_ref):
        @pl.when(pl.program_id(2) == 0)
        def _():
            acc_ref[...] = jnp.zeros_like(acc_ref)

        acc_ref[...] += jnp.dot(a_ref[...], b_ref[...],
                                preferred_element_type=jnp.float32)

        @pl.when(pl.program_id(2) == pl.num_programs(2) - 1)
        def _():
            y = acc_ref[...] * s_ref[...] + t_ref[...]
            o_ref[...] = _apply_act(y, activation).astype(o_ref.dtype)
    return kernel


_MM_SINGLE = {a: _make_mm_single(a) for a in (None, "relu", "sigmoid")}
_MM_MULTI = {a: _make_mm_multi(a) for a in (None, "relu", "sigmoid")}

_SMALL_MM = 1_000_000  # below this (or M<32 / N<32) plain jnp.dot is cheaper


def _round_up(x, m):
    return (x + m - 1) // m * m


def matmul_scale_shift(a, b, scale, shift, activation=None, out_dtype=ACT_DTYPE):
    """out = act((a @ b) * scale + shift); a:[M,K], b:[K,N], scale/shift:[N]."""
    M, K = a.shape
    _, N = b.shape
    scale = scale.astype(jnp.float32)
    shift = shift.astype(jnp.float32)

    # Tiny / skinny problems: let XLA handle them (padding + launch overhead
    # of a 128-wide Pallas tile dwarfs the useful FLOPs).
    if M * N * K < _SMALL_MM or M < 32 or N < 32:
        y = jnp.dot(a.astype(jnp.float32), b.astype(jnp.float32))
        y = y * scale[None, :] + shift[None, :]
        return _apply_act(y, activation).astype(out_dtype)

    TN = 128                                  # lane-dense output blocks
    Np = _round_up(N, TN)
    if M <= 256:
        TM = _round_up(M, 8)
        Mp = TM
    else:
        TM = 256
        Mp = _round_up(M, TM)
    Kp = _round_up(K, 128)
    multi_k = Kp > 1024
    if multi_k:
        TK = 512
        Kp = _round_up(K, TK)
    else:
        TK = Kp                               # single K step

    # bf16 MXU inputs, f32 epilogue. (Zero padding contributes nothing.)
    a_p = jnp.pad(a.astype(jnp.bfloat16), ((0, Mp - M), (0, Kp - K)))
    b_p = jnp.pad(b.astype(jnp.bfloat16), ((0, Kp - K), (0, Np - N)))
    s_p = jnp.pad(scale, (0, Np - N)).reshape(1, Np)
    t_p = jnp.pad(shift, (0, Np - N)).reshape(1, Np)

    if multi_k:
        grid = (Mp // TM, Np // TN, Kp // TK)
        out = pl.pallas_call(
            _MM_MULTI[activation],
            out_shape=jax.ShapeDtypeStruct((Mp, Np), out_dtype),
            grid_spec=pltpu.PrefetchScalarGridSpec(
                num_scalar_prefetch=0,
                grid=grid,
                in_specs=[
                    pl.BlockSpec((TM, TK), lambda i, j, k: (i, k)),
                    pl.BlockSpec((TK, TN), lambda i, j, k: (k, j)),
                    pl.BlockSpec((1, TN), lambda i, j, k: (0, j)),
                    pl.BlockSpec((1, TN), lambda i, j, k: (0, j)),
                ],
                out_specs=pl.BlockSpec((TM, TN), lambda i, j, k: (i, j)),
                scratch_shapes=[pltpu.VMEM((TM, TN), jnp.float32)]),
            compiler_params=pltpu.CompilerParams(
                dimension_semantics=("parallel", "parallel", "arbitrary")),
        )(a_p, b_p, s_p, t_p)
    else:
        grid = (Mp // TM, Np // TN)
        out = pl.pallas_call(
            _MM_SINGLE[activation],
            out_shape=jax.ShapeDtypeStruct((Mp, Np), out_dtype),
            grid_spec=pltpu.PrefetchScalarGridSpec(
                num_scalar_prefetch=0,
                grid=grid,
                in_specs=[
                    pl.BlockSpec((TM, TK), lambda i, j: (i, 0)),
                    pl.BlockSpec((TK, TN), lambda i, j: (0, j)),
                    pl.BlockSpec((1, TN), lambda i, j: (0, j)),
                    pl.BlockSpec((1, TN), lambda i, j: (0, j)),
                ],
                out_specs=pl.BlockSpec((TM, TN), lambda i, j: (i, j))),
            compiler_params=pltpu.CompilerParams(
                dimension_semantics=("parallel", "parallel")),
        )(a_p, b_p, s_p, t_p)
    return out[:M, :N]


# ---------------------------------------------------------------------------
# Pallas kernel 2: true depthwise conv (shift-and-FMA per tap on the VPU).
# ---------------------------------------------------------------------------
def _make_dw_kernel(kh, kw, Ho, Wo):
    def kernel(x_ref, w_ref, b_ref, o_ref):
        w = w_ref[...]                                   # (kh*kw, C) f32
        acc = None
        for i in range(kh):
            for j in range(kw):
                tap = x_ref[0, i:i + Ho, j:j + Wo, :].astype(jnp.float32)
                term = tap * w[i * kw + j]
                acc = term if acc is None else acc + term
        acc = acc + b_ref[...]
        o_ref[0] = acc.astype(o_ref.dtype)
    return kernel


@functools.partial(jax.jit, static_argnames=("kh", "kw"))
def _depthwise_conv_jit(x, w, b, *, kh, kw):
    B, H, W, C = x.shape
    ph, pw = kh // 2, kw // 2
    xp = jnp.pad(x, ((0, 0), (ph, ph), (pw, pw), (0, 0)))
    Hp, Wp = H + 2 * ph, W + 2 * pw
    kernel = _make_dw_kernel(kh, kw, H, W)
    return pl.pallas_call(
        kernel,
        out_shape=jax.ShapeDtypeStruct((B, H, W, C), x.dtype),
        grid_spec=pltpu.PrefetchScalarGridSpec(
            num_scalar_prefetch=0,
            grid=(B,),
            in_specs=[
                pl.BlockSpec((1, Hp, Wp, C), lambda n: (n, 0, 0, 0)),
                pl.BlockSpec((kh * kw, C), lambda n: (0, 0)),
                pl.BlockSpec((1, C), lambda n: (0, 0)),
            ],
            out_specs=pl.BlockSpec((1, H, W, C), lambda n: (n, 0, 0, 0))),
        compiler_params=pltpu.CompilerParams(dimension_semantics=("parallel",)),
    )(xp, w.reshape(kh * kw, C).astype(jnp.float32),
      b.reshape(1, C).astype(jnp.float32))


def depthwise_conv(x, p):
    return _depthwise_conv_jit(x, p["w"], p["b"], kh=p["kh"], kw=p["kw"])


# ---------------------------------------------------------------------------
# Pallas kernel 3: GroupNorm (+ optional ReLU), one batch element per grid step.
# Two-pass variance (mean, then mean((x-m)^2)) in f32.  When group size == 1
# (per-channel norm) the group-averaging matmul is skipped entirely.
# ---------------------------------------------------------------------------
def _make_gn_kernel(relu, identity):
    if identity:
        def kernel(x_ref, g_ref, b_ref, o_ref):
            x = x_ref[0].astype(jnp.float32)                   # (HW, C)
            m = jnp.mean(x, axis=0, keepdims=True)
            d = x - m
            v = jnp.mean(d * d, axis=0, keepdims=True)
            y = d * jax.lax.rsqrt(v + 1e-5) * g_ref[...] + b_ref[...]
            if relu:
                y = jnp.maximum(y, 0.0)
            o_ref[0] = y.astype(o_ref.dtype)
    else:
        def kernel(x_ref, a_ref, g_ref, b_ref, o_ref):
            x = x_ref[0].astype(jnp.float32)                   # (HW, C)
            s1 = jnp.mean(x, axis=0, keepdims=True)            # (1, C)
            m = jnp.dot(s1, a_ref[...], preferred_element_type=jnp.float32)
            d = x - m
            s2 = jnp.mean(d * d, axis=0, keepdims=True)
            v = jnp.dot(s2, a_ref[...], preferred_element_type=jnp.float32)
            y = d * jax.lax.rsqrt(v + 1e-5) * g_ref[...] + b_ref[...]
            if relu:
                y = jnp.maximum(y, 0.0)
            o_ref[0] = y.astype(o_ref.dtype)
    return kernel


_GN_KERNELS = {(r, i): _make_gn_kernel(r, i)
               for r in (False, True) for i in (False, True)}


@functools.partial(jax.jit, static_argnames=("groups", "relu"))
def _group_norm_flat(xf, gamma, beta, groups, relu):
    # TODO(synk): at real image resolutions the (1, HW, C) slab should be tiled
    # over HW (running moments) to stay inside v7x's smaller VMEM.
    B, HW, C = xf.shape
    cg = C // groups
    g = gamma.astype(jnp.float32).reshape(1, C)
    b = beta.astype(jnp.float32).reshape(1, C)
    if cg == 1:
        in_specs = [
            pl.BlockSpec((1, HW, C), lambda n: (n, 0, 0)),
            pl.BlockSpec((1, C), lambda n: (0, 0)),
            pl.BlockSpec((1, C), lambda n: (0, 0)),
        ]
        args = (xf, g, b)
        kernel = _GN_KERNELS[(relu, True)]
    else:
        gid = jnp.arange(C) // cg
        amat = (gid[:, None] == gid[None, :]).astype(jnp.float32) / cg
        in_specs = [
            pl.BlockSpec((1, HW, C), lambda n: (n, 0, 0)),
            pl.BlockSpec((C, C), lambda n: (0, 0)),
            pl.BlockSpec((1, C), lambda n: (0, 0)),
            pl.BlockSpec((1, C), lambda n: (0, 0)),
        ]
        args = (xf, amat, g, b)
        kernel = _GN_KERNELS[(relu, False)]
    return pl.pallas_call(
        kernel,
        out_shape=jax.ShapeDtypeStruct((B, HW, C), xf.dtype),
        grid_spec=pltpu.PrefetchScalarGridSpec(
            num_scalar_prefetch=0, grid=(B,),
            in_specs=in_specs,
            out_specs=pl.BlockSpec((1, HW, C), lambda n: (n, 0, 0))),
        compiler_params=pltpu.CompilerParams(
            dimension_semantics=("parallel",)),        # megacore-split on v7x
    )(*args)


def group_norm(x, gamma, beta, groups, relu=False):
    B, H, W, C = x.shape
    y = _group_norm_flat(x.reshape(B, H * W, C), gamma, beta,
                         groups=groups, relu=relu)
    return y.reshape(B, H, W, C)


# ---------------------------------------------------------------------------
# Convolution = im2col + Pallas matmul, fused into one jitted program per shape
# so the pad / patch-extraction stays inside the same XLA program as the kernel.
# TODO(synk): a direct-conv Pallas variant (tap index as a grid axis with a
# shifted A index_map) would remove the im2col materialization entirely.
# ---------------------------------------------------------------------------
def _extract_patches(x, kh, kw, stride, ph, pw):
    B, H, W, C = x.shape
    xp = jnp.pad(x, ((0, 0), (ph, ph), (pw, pw), (0, 0)))
    Ho = (H + 2 * ph - kh) // stride + 1
    Wo = (W + 2 * pw - kw) // stride + 1
    cols = []
    for i in range(kh):
        for j in range(kw):
            cols.append(xp[:, i:i + Ho * stride:stride,
                           j:j + Wo * stride:stride, :])
    return jnp.concatenate(cols, axis=-1), Ho, Wo


@functools.partial(jax.jit,
                   static_argnames=("kh", "kw", "stride", "ph", "pw", "activation"))
def _conv2d_jit(x, w, scale, shift, *, kh, kw, stride, ph, pw, activation):
    B, H, W, C = x.shape
    cout = w.shape[-1]
    patches, Ho, Wo = _extract_patches(x, kh, kw, stride, ph, pw)
    a = patches.reshape(-1, kh * kw * C)
    out = matmul_scale_shift(a, w.reshape(kh * kw * C, cout), scale, shift,
                             activation=activation)
    return out.reshape(B, Ho, Wo, cout)


def conv2d(x, w, b=None, stride=1, padding=None,
           bn_scale=None, bn_shift=None, activation=None):
    kh, kw, cin, cout = w.shape
    if padding is None:
        padding = (kh // 2, kw // 2)
    if bn_scale is None:
        scale = jnp.ones((cout,), jnp.float32)
        shift = b.astype(jnp.float32) if b is not None else jnp.zeros((cout,), jnp.float32)
    else:
        scale, shift = bn_scale, bn_shift
    return _conv2d_jit(x, w, scale, shift, kh=kh, kw=kw, stride=stride,
                       ph=padding[0], pw=padding[1], activation=activation)


@functools.partial(jax.jit, static_argnames=("out_h", "out_w", "align_corners"))
def _bilinear_jit(x, *, out_h, out_w, align_corners):
    B, H, W, C = x.shape

    def coords(out, inn):
        o = jnp.arange(out, dtype=jnp.float32)
        if align_corners:
            if out == 1:
                return jnp.zeros((out,), jnp.float32)
            return o * (inn - 1) / (out - 1)
        return jnp.clip((o + 0.5) * inn / out - 0.5, 0.0, inn - 1)

    ys, xs = coords(out_h, H), coords(out_w, W)
    y0 = jnp.floor(ys).astype(jnp.int32)
    y1 = jnp.minimum(y0 + 1, H - 1)
    x0 = jnp.floor(xs).astype(jnp.int32)
    x1 = jnp.minimum(x0 + 1, W - 1)
    wy = (ys - y0.astype(jnp.float32))[None, :, None, None]
    wx = (xs - x0.astype(jnp.float32))[None, None, :, None]
    r0, r1 = x[:, y0], x[:, y1]
    top = r0[:, :, x0] * (1 - wx) + r0[:, :, x1] * wx
    bot = r1[:, :, x0] * (1 - wx) + r1[:, :, x1] * wx
    return (top * (1 - wy) + bot * wy).astype(x.dtype)


def bilinear_resize(x, out_h, out_w, align_corners):
    if (out_h, out_w) == (x.shape[1], x.shape[2]):
        return x
    return _bilinear_jit(x, out_h=out_h, out_w=out_w, align_corners=align_corners)


# ---------------------------------------------------------------------------
# Deterministic parameter construction.
# ---------------------------------------------------------------------------
class KeyGen:
    def __init__(self, seed=0):
        self._key = jax.random.PRNGKey(seed)

    def __call__(self):
        self._key, sub = jax.random.split(self._key)
        return sub


def conv_p(kg, kh, kw, cin, cout, bias=True):
    std = math.sqrt(2.0 / (kh * kw * cin))
    p = {"w": jax.random.normal(kg(), (kh, kw, cin, cout), jnp.float32) * std}
    p["b"] = (jax.random.normal(kg(), (cout,), jnp.float32) * 0.01) if bias else None
    return p


def bn_p(kg, c):
    gamma = jax.random.uniform(kg(), (c,), jnp.float32, 0.8, 1.2)
    beta = jax.random.normal(kg(), (c,), jnp.float32) * 0.05
    # eval-mode BatchNorm with running_mean=0, running_var=1
    return {"scale": gamma / jnp.sqrt(1.0 + 1e-5), "shift": beta}


def convbn_p(kg, cin, cout, k=3):
    return {"conv": conv_p(kg, k, k, cin, cout, bias=False), "bn": bn_p(kg, cout)}


def conv_bn_relu(x, p, stride=1):
    return conv2d(x, p["conv"]["w"], stride=stride,
                  bn_scale=p["bn"]["scale"], bn_shift=p["bn"]["shift"],
                  activation="relu")


def dw_p(kg, kh, kw, c):
    std = math.sqrt(2.0 / (kh * kw))
    return {"w": jax.random.normal(kg(), (kh, kw, c), jnp.float32) * std,
            "b": jax.random.normal(kg(), (c,), jnp.float32) * 0.01,
            "kh": kh, "kw": kw}


# ---------------------------------------------------------------------------
# Sub-modules.
# TODO(synk): ChannelAttention / SpatialAttention / SegNext_Attention /
# conv3x3_bn_relu / ResNet are not defined in the provided source; standard
# reference implementations (CBAM channel/spatial attention, SegNeXt MSCA,
# conv+BN+ReLU) with matching shapes are used.
# ---------------------------------------------------------------------------
def ca_p(kg, c, ratio=16):
    return {"fc1": conv_p(kg, 1, 1, c, c // ratio, bias=False),
            "fc2": conv_p(kg, 1, 1, c // ratio, c, bias=False)}


def channel_attention(x, p):
    B, H, W, C = x.shape
    hid = p["fc1"]["w"].shape[-1]
    w1 = p["fc1"]["w"].reshape(C, hid)
    w2 = p["fc2"]["w"].reshape(hid, C)
    # batch avg-pool and max-pool rows through one (shared-weight) MLP
    pooled = jnp.concatenate([jnp.mean(x, axis=(1, 2)),
                              jnp.max(x, axis=(1, 2))], axis=0)       # (2B, C)
    h = matmul_scale_shift(pooled, w1, jnp.ones((hid,), jnp.float32),
                           jnp.zeros((hid,), jnp.float32), activation="relu")
    h = matmul_scale_shift(h, w2, jnp.ones((C,), jnp.float32),
                           jnp.zeros((C,), jnp.float32))
    att = jax.nn.sigmoid(h[:B] + h[B:])
    return att.reshape(B, 1, 1, C).astype(x.dtype)


def sa_p(kg):
    return {"conv": conv_p(kg, 7, 7, 2, 1, bias=False)}


def spatial_attention(x, p):
    cat = jnp.concatenate([jnp.mean(x, axis=-1, keepdims=True),
                           jnp.max(x, axis=-1, keepdims=True)], axis=-1)
    return conv2d(cat, p["conv"]["w"], activation="sigmoid")


def segnext_p(kg, c):
    return {"proj1": conv_p(kg, 1, 1, c, c),
            "conv0": dw_p(kg, 5, 5, c),
            "c0_1": dw_p(kg, 1, 7, c), "c0_2": dw_p(kg, 7, 1, c),
            "c1_1": dw_p(kg, 1, 11, c), "c1_2": dw_p(kg, 11, 1, c),
            "c2_1": dw_p(kg, 1, 21, c), "c2_2": dw_p(kg, 21, 1, c),
            "conv3": conv_p(kg, 1, 1, c, c),
            "proj2": conv_p(kg, 1, 1, c, c)}


def segnext_attention(x, p):
    shortcut = x
    x = conv2d(x, p["proj1"]["w"], p["proj1"]["b"])
    x = jax.nn.gelu(x, approximate=False)
    u = x
    attn = depthwise_conv(x, p["conv0"])
    a0 = depthwise_conv(depthwise_conv(attn, p["c0_1"]), p["c0_2"])
    a1 = depthwise_conv(depthwise_conv(attn, p["c1_1"]), p["c1_2"])
    a2 = depthwise_conv(depthwise_conv(attn, p["c2_1"]), p["c2_2"])
    attn = attn + a0 + a1 + a2
    attn = conv2d(attn, p["conv3"]["w"], p["conv3"]["b"])
    x = attn * u
    x = conv2d(x, p["proj2"]["w"], p["proj2"]["b"])
    return x + shortcut


def ffm_p(kg, in_left, in_down):
    return {"up": convbn_p(kg, in_down, in_left),
            "ca": ca_p(kg, in_left), "sa": sa_p(kg),
            "fuse": convbn_p(kg, in_left * 2, in_left),
            "left": convbn_p(kg, in_left * 2, in_left),
            "down": convbn_p(kg, in_left * 2, in_left),
            "final": convbn_p(kg, in_left * 2, in_left),
            "att": segnext_p(kg, in_left)}


def ffm(left, down, p):
    H, W = left.shape[1], left.shape[2]
    if down.shape[1:3] != left.shape[1:3]:
        down = conv_bn_relu(bilinear_resize(down, H, W, align_corners=False), p["up"])
    sa = spatial_attention(down, p["sa"])           # (B,H,W,1)
    ca = channel_attention(left, p["ca"])           # (B,1,1,C)
    fuse = conv_bn_relu(jnp.concatenate([sa * left, ca * down], axis=-1), p["fuse"])
    fuse = segnext_attention(fuse, p["att"])
    l = conv_bn_relu(jnp.concatenate([fuse, left], axis=-1), p["left"])
    d = conv_bn_relu(jnp.concatenate([fuse, down], axis=-1), p["down"])
    return conv_bn_relu(jnp.concatenate([l, d], axis=-1), p["final"])


def bcm_p(kg, c):
    return {"c1": convbn_p(kg, c, c), "c2": convbn_p(kg, c, c),
            "c3": convbn_p(kg, c, c), "c4": convbn_p(kg, c, c)}


def bcm(f1, f2, f3, f4, p):
    f4 = conv_bn_relu(bilinear_resize(f4, f3.shape[1], f3.shape[2], True), p["c4"])
    f3 = conv_bn_relu(bilinear_resize(f4 + f3, f2.shape[1], f2.shape[2], True), p["c3"])
    f2 = conv_bn_relu(bilinear_resize(f3 + f2, f1.shape[1], f1.shape[2], True), p["c2"])
    return conv_bn_relu(f2 + f1, p["c1"])


def gate_p(kg, cq):
    return {"c1": conv_p(kg, 3, 3, cq, cq),
            "g": jax.random.uniform(kg(), (cq,), jnp.float32, 0.8, 1.2),
            "b": jax.random.normal(kg(), (cq,), jnp.float32) * 0.05,
            "c2": conv_p(kg, 1, 1, cq, 1)}


def gate(x, p, groups):
    h = conv2d(x, p["c1"]["w"], p["c1"]["b"])
    h = group_norm(h, p["g"], p["b"], groups, relu=True)
    return conv2d(h, p["c2"]["w"], p["c2"]["b"])


def big_p(kg, c, groups=16):
    return {"g1": gate_p(kg, c // 4), "g2": gate_p(kg, c // 4),
            "g3": gate_p(kg, c // 4), "g4": gate_p(kg, c // 4),
            "sa1": conv_p(kg, 1, 1, 4, 16), "sa2": conv_p(kg, 1, 1, 16, 4),
            "conv": conv_p(kg, 1, 1, c, c),
            "gng": jax.random.uniform(kg(), (c,), jnp.float32, 0.8, 1.2),
            "gnb": jax.random.normal(kg(), (c,), jnp.float32) * 0.05,
            "channel": c, "groups": groups}


def big(x, edge, p):
    groups = p["groups"]
    x1, x2, x3, x4 = jnp.split(x, 4, axis=-1)
    cm1 = gate(x1, p["g1"], groups)
    cm2 = gate(x2, p["g2"], groups)
    cm3 = gate(x3, p["g3"], groups)
    cm4 = gate(x4, p["g4"], groups)
    se = jax.nn.sigmoid(edge)
    e = jnp.concatenate([cm1 * se, cm2 * se, cm3 * se, cm4 * se], axis=-1)  # (B,H,W,4)
    pooled = jnp.mean(e, axis=(1, 2))                                       # (B,4)
    h = matmul_scale_shift(pooled, p["sa1"]["w"].reshape(4, 16),
                           jnp.ones((16,), jnp.float32), p["sa1"]["b"],
                           activation="relu")
    h = matmul_scale_shift(h, p["sa2"]["w"].reshape(16, 4),
                           jnp.ones((4,), jnp.float32), p["sa2"]["b"])
    w = jax.nn.softmax(h, axis=-1)                                          # (B,4)
    parts = [x1, x2, x3, x4]
    nx = jnp.concatenate(
        [parts[i] * w[:, i][:, None, None, None].astype(x.dtype) for i in range(4)],
        axis=-1)
    # nn.Conv2d(c, c, kernel_size=1, padding=1) -> spatial dims grow by 2
    h = conv2d(nx, p["conv"]["w"], p["conv"]["b"], padding=(1, 1))
    return group_norm(h, p["gng"], p["gnb"], groups, relu=True)


def decoder_p(kg):
    sc = 64
    p = {"down1": convbn_p(kg, 256, sc), "down2": convbn_p(kg, 512, sc),
         "down3": convbn_p(kg, 1024, sc), "down4": convbn_p(kg, 2048, sc)}
    for i in range(1, 7):
        p["cff%d" % i] = ffm_p(kg, sc, sc)
    p["big"] = big_p(kg, sc)
    p["bcm"] = bcm_p(kg, sc)
    p["conv_bcm"] = conv_p(kg, 1, 1, sc, 1)
    p["conv_sal"] = conv_p(kg, 1, 1, sc, 1)
    return p


def decoder(fea, shape, p):
    fea1 = conv_bn_relu(fea[0], p["down1"])
    fea2 = conv_bn_relu(fea[1], p["down2"])
    fea3 = conv_bn_relu(fea[2], p["down3"])
    fea4 = conv_bn_relu(fea[3], p["down4"])
    bcm_f = bcm(fea1, fea2, fea3, fea4, p["bcm"])
    out3_1 = ffm(fea3, fea4, p["cff3"])
    out2_1 = ffm(fea2, out3_1, p["cff2"])
    out1_1 = ffm(fea1, out2_1, p["cff1"])
    out2_2 = ffm(out2_1, out3_1, p["cff5"])
    out1_2 = ffm(out1_1, out2_2, p["cff4"])
    out1_3 = ffm(out1_2, out2_2, p["cff6"])
    bcm_o = conv2d(bcm_f, p["conv_bcm"]["w"], p["conv_bcm"]["b"])
    sal = conv2d(big(out1_3, bcm_o, p["big"]),
                 p["conv_sal"]["w"], p["conv_sal"]["b"])
    bcm_o = bilinear_resize(bcm_o, shape[0], shape[1], True)
    sal = bilinear_resize(sal, shape[0], shape[1], True)
    return sal, bcm_o


# TODO(synk): the ResNet() backbone definition is not provided; a deterministic
# conv-bn-relu stand-in producing ResNet-50 feature shapes
# (256/512/1024/2048 channels at strides 4/8/16/32) is used instead.
def encoder_p(kg):
    return {"s1": convbn_p(kg, 3, 256, k=7),
            "s2": convbn_p(kg, 256, 512),
            "s3": convbn_p(kg, 512, 1024),
            "s4": convbn_p(kg, 1024, 2048)}


def encoder(x, p):
    f1 = conv_bn_relu(x, p["s1"], stride=4)
    f2 = conv_bn_relu(f1, p["s2"], stride=2)
    f3 = conv_bn_relu(f2, p["s3"], stride=2)
    f4 = conv_bn_relu(f3, p["s4"], stride=2)
    return [f1, f2, f3, f4]


def pgn_init(seed=0):
    kg = KeyGen(seed)
    return {"enc": encoder_p(kg), "dec": decoder_p(kg)}


def pgn_forward(params, x_nchw, shape=None):
    x = jnp.transpose(x_nchw, (0, 2, 3, 1)).astype(ACT_DTYPE)  # NCHW -> NHWC
    fea = encoder(x, params["enc"])
    if shape is None:
        shape = (x_nchw.shape[2], x_nchw.shape[3])
    sal, bcm_o = decoder(fea, shape, params["dec"])
    # back to NCHW (float32) like the PyTorch reference
    return (jnp.transpose(sal.astype(jnp.float32), (0, 3, 1, 2)),
            jnp.transpose(bcm_o.astype(jnp.float32), (0, 3, 1, 2)))


if __name__ == "__main__":
    key = jax.random.PRNGKey(0)
    x = jax.random.normal(key, (2, 3, 64, 64), jnp.float32)
    params = pgn_init(seed=0)
    sal, bcm_out = pgn_forward(params, x)
    sal = jax.block_until_ready(sal)
    bcm_out = jax.block_until_ready(bcm_out)
    assert sal.shape == (2, 1, 64, 64), sal.shape
    assert bcm_out.shape == (2, 1, 64, 64), bcm_out.shape
    assert bool(jnp.all(jnp.isfinite(sal))) and bool(jnp.all(jnp.isfinite(bcm_out)))
    print("KERNEL_OK")
</pallas_src>

<mosaic_0001>
module attributes {stable_mosaic.version = 11 : i64} {
  func.func @kernel(%arg0: i32, %arg1: i32, %arg2: memref<256x256xbf16, #tpu.memory_space<vmem>>, %arg3: memref<256x128xbf16, #tpu.memory_space<vmem>>, %arg4: memref<1x128xf32, #tpu.memory_space<vmem>>, %arg5: memref<1x128xf32, #tpu.memory_space<vmem>>, %arg6: memref<256x128xbf16, #tpu.memory_space<vmem>>) attributes {dimension_semantics = [#tpu.dimension_semantics<parallel>, #tpu.dimension_semantics<parallel>], iteration_bounds = array<i64: 2, 2>, scalar_prefetch = 0 : i64, scratch_operands = 0 : i64, tpu.core_type = #tpu.core_type<tc>, window_params = [{transform_indices = @transform_0, window_bounds = array<i64: 256, 256>}, {transform_indices = @transform_1, window_bounds = array<i64: 256, 128>}, {transform_indices = @transform_2, window_bounds = array<i64: 1, 128>}, {transform_indices = @transform_3, window_bounds = array<i64: 1, 128>}, {transform_indices = @transform_4, window_bounds = array<i64: 256, 128>}]} {
    %c0 = arith.constant 0 : index
    %c0_0 = arith.constant 0 : index
    %0 = vector.load %arg2[%c0, %c0_0] : memref<256x256xbf16, #tpu.memory_space<vmem>>, vector<256x256xbf16>
    %c0_1 = arith.constant 0 : index
    %c0_2 = arith.constant 0 : index
    %1 = vector.load %arg3[%c0_1, %c0_2] : memref<256x128xbf16, #tpu.memory_space<vmem>>, vector<256x128xbf16>
    %cst = arith.constant dense<0.000000e+00> : vector<256x128xf32>
    %2 = tpu.matmul %0, %1, %cst {dimension_numbers = #tpu.dot_dimension_numbers<[1], [0], [0], [1], [0, 0, 1, 1], [], []>} : vector<256x256xbf16>, vector<256x128xbf16>, vector<256x128xf32> -> vector<256x128xf32>
    %c0_3 = arith.constant 0 : index
    %c0_4 = arith.constant 0 : index
    %3 = vector.load %arg4[%c0_3, %c0_4] : memref<1x128xf32, #tpu.memory_space<vmem>>, vector<1x128xf32>
    %4 = vector.broadcast %3 : vector<1x128xf32> to vector<256x128xf32>
    %5 = arith.mulf %2, %4 : vector<256x128xf32>
    %c0_5 = arith.constant 0 : index
    %c0_6 = arith.constant 0 : index
    %6 = vector.load %arg5[%c0_5, %c0_6] : memref<1x128xf32, #tpu.memory_space<vmem>>, vector<1x128xf32>
    %7 = vector.broadcast %6 : vector<1x128xf32> to vector<256x128xf32>
    %8 = arith.addf %5, %7 : vector<256x128xf32>
    %cst_7 = arith.constant 0.000000e+00 : f32
    %9 = vector.broadcast %cst_7 : f32 to vector<256x128xf32>
    %10 = arith.maximumf %8, %9 : vector<256x128xf32>
    %11 = arith.truncf %10 : vector<256x128xf32> to vector<256x128xbf16>
    %c0_8 = arith.constant 0 : index
    %c0_9 = arith.constant 0 : index
    %12 = vector.load %arg6[%c0_8, %c0_9] : memref<256x128xbf16, #tpu.memory_space<vmem>>, vector<256x128xbf16>
    tpu.vector_store %arg6[%c0_8, %c0_9], %11 {strides = array<i32>} : memref<256x128xbf16, #tpu.memory_space<vmem>>, vector<256x128xbf16>,
    return
  }
  func.func @transform_0(%arg0: i32, %arg1: i32) -> (i32, i32) {
    %c0_i32 = arith.constant 0 : i32
    %c0_i32_0 = arith.constant 0 : i32
    return %arg0, %c0_i32 : i32, i32
  }
  func.func @transform_1(%arg0: i32, %arg1: i32) -> (i32, i32) {
    %c0_i32 = arith.constant 0 : i32
    %c0_i32_0 = arith.constant 0 : i32
    return %c0_i32, %arg1 : i32, i32
  }
  func.func @transform_2(%arg0: i32, %arg1: i32) -> (i32, i32) {
    %c0_i32 = arith.constant 0 : i32
    %c0_i32_0 = arith.constant 0 : i32
    return %c0_i32, %arg1 : i32, i32
  }
  func.func @transform_3(%arg0: i32, %arg1: i32) -> (i32, i32) {
    %c0_i32 = arith.constant 0 : i32
    %c0_i32_0 = arith.constant 0 : i32
    return %c0_i32, %arg1 : i32, i32
  }
  func.func @transform_4(%arg0: i32, %arg1: i32) -> (i32, i32) {
    %c0_i32 = arith.constant 0 : i32
    return %arg0, %arg1 : i32, i32
  }
}

</mosaic_0001>

<bundles_post_ra>
// kernel: _conv2d_jit.1
= control target key start
LH: loop header
LB: loop body
LE: loop exit
PB: predicated region body
PF: predicated region fallthrough
CT: control target
= control target key end

     0   :  { %9 = vsyncpa [#allocation4], 0  ;;  %s2249_s0 = inlined_call_operand.vmem [shape: bf16[512,256], index: 0, kind: input, shape index: {}]   ;;  %s2250_s1 = inlined_call_operand.vmem [shape: bf16[256,256], index: 1, kind: input, shape index: {}]   ;;  %s2251_s2 = inlined_call_operand.vmem [shape: f32[1,256], index: 2, kind: input, shape index: {}]   ;;  %s2252_s3 = inlined_call_operand.vmem [shape: f32[1,256], index: 3, kind: input, shape index: {}]   ;;  %s2253_s4 = inlined_call_operand.hbm [shape: bf16[512,256], index: 4, kind: output, shape index: {}]  }
   0x1   :  { %11 = vsyncpa [#allocation4 + $0x1], 0  ;;  %s1829_s15 = smov 0   ;;  %s1831_s16 = smov 0  }
   0x2   :  { %s1833_s17 = smov 0   ;;  %s1835_s18 = smov 0  }
   0x3   :  { %s1837_s19 = smov 0   ;;  %s1839_s20 = smov 0  }
   0x4   :  { %s1841_s21 = smov 0   ;;  %s1843_s22 = smov 0  }
   0x5   :  { %s1845_s23 = smov 0   ;;  %s1847_s24 = smov 0  }
   0x6 LB: > { %s1226_s25 = sadd.s32 4294967295, %s1799_s24   ;;  %s1227_s26 = sadd.s32 4294967294, %s1799_s24   ;;  %s1799_s24 = sphi %s1847_s24, %s17_s24   ;;  %s1795_s23 = sphi %s1845_s23, %s2265_s23   ;;  %s1791_s22 = sphi %s1843_s22, %s2264_s22   ;;  %s1787_s21 = sphi %s1841_s21, %s2263_s21   ;;  %s1783_s20 = sphi %s1839_s20, %s2262_s20   ;;  %s1779_s19 = sphi %s1837_s19, %s2261_s19   ;;  %s1775_s18 = sphi %s1835_s18, %s2260_s18   ;;  %s1771_s17 = sphi %s1833_s17, %s2259_s17   ;;  %s1767_s16 = sphi %s1831_s16, %s2258_s16   ;;  %s1763_s15 = sphi %s1829_s15, %s2257_s15  }
   0x7   : > { %s26_s27 = sadd.s32 1, %s1791_s22  ;;  %s29_s28 = sadd.s32 1, %s1795_s23 }
   0x8   : > { %p27_p0 = scmp.ge.s32.totalorder %s26_s27, 2  ;;  %s62_s29 = sadd.s32 1, %s1779_s19 }
   0x9   : > { %p69_p1 = scmp.ne.s32.totalorder %s1779_s19, %s1775_s18  ;;  %p70_p2 = scmp.eq.s32.totalorder %s1799_s24, 0 }
   0xa   : > { %s2267_s27 = smov (%p27_p0, %s26_s27), 0  ;;  %s2269_s28 = smov (!%p27_p0, %s29_s28), %s1795_s23 }
   0xb   : > { %s59_s30 = ssub.s32 %s1791_s22, %s2267_s27  ;;  %p1892_p3 = por %p70_p2, %p69_p1 }
   0xc   : > { %p31_p4 = scmp.ge.s32.totalorder %s2269_s28, 2  ;;  %p60_p5 = scmp.eq.s32.totalorder %s59_s30, 0 }
   0xd   : > { %s142_s6 = sadd.s32 1, %s1771_s17  ;;  %p152_p6 = scmp.ne.s32.totalorder %s1771_s17, %s1767_s16 }
   0xe   : > { %s2271_s28 = smov (%p31_p4, %s2269_s28), 0  ;;  %p153_p7 = scmp.eq.s32.totalorder %s1226_s25, 3 }
   0xf   : > { %s1902_s7 = scalar_select %p60_p5, %s1779_s19, %s62_s29  }
  0x10   : > { %s137_s8 = ssub.s32 %s1795_s23, %s2271_s28  ;;  %p158_p8 = scmp.ne.s32.totalorder %s1767_s16, %s1763_s15 }
  0x11   : > { %s139_s9 = sor.u32 %s137_s8, %s59_s30  ;;  %p1908_p10 = por %p153_p7, %p152_p6 }
  0x12   : > { %p140_p9 = scmp.eq.s32.totalorder %s139_s9, 0  ;;  %p159_p11 = scmp.eq.s32.totalorder %s1227_s26, 3 }
  0x13   : > { %p1229_p13 = scmp.ge.s32.totalorder %s1799_s24, 4 }
  0x14   : > { %s1913_s11 = scalar_select %p140_p9, %s1771_s17, %s142_s6  }
  0x15   : > { %p1915_p12 = por %p159_p11, %p158_p8  ;;  %175 = sbr.rel (%p1229_p13) target bundleno = 62 (0x3e), region = 16 }
  0x1a   : > { %188 = sbr.rel (!%p1892_p3) target bundleno = 62 (0x3e), region = 24  ;;  %s190_s13 = sand.u32 (%p1892_p3), 1, %s1779_s19  }
  0x1b   : > { %s1231_s14 = sshll.u32 (%p1892_p3), %s1791_s22, 2  ;;  %s1230_s25 = sshll.u32 (%p1892_p3), %s190_s13, 7 }
  0x1c   : > { %s1927_s26 = scalar_lea.vmem (%p1892_p3), %s2250_s1, %s1231_s14  ;;  %s1931_s5 = scalar_lea.vmem (%p1892_p3), [#allocation2], %s1230_s25 }
  0x1d   : > { %v211_v0 = vld [vmem:[%s1927_s26] sm:$0xf] (%p1892_p3)  ;;  %v213_v1 = vld [vmem:[%s1927_s26 + $0x8] sm:$0xf] (%p1892_p3)  ;;  %v215_v2 = vld [vmem:[%s1927_s26 + $0x10] sm:$0xf] (%p1892_p3) }
  0x1e   : > { %212 = vst [vmem:[%s1931_s5] sm:$0xf] (%p1892_p3), %v211_v0  ;;  %v217_v3 = vld [vmem:[%s1927_s26 + $0x18] sm:$0xf] (%p1892_p3)  ;;  %v219_v4 = vld [vmem:[%s1927_s26 + $0x20] sm:$0xf] (%p1892_p3) }
  0x1f   : > { %214 = vst [vmem:[%s1931_s5 + $0x4] sm:$0xf] %v213_v1  ;;  %v221_v5 = vld [vmem:[%s1927_s26 + $0x28] sm:$0xf]  ;;  %v223_v6 = vld [vmem:[%s1927_s26 + $0x30] sm:$0xf] }
  0x20   : > { %216 = vst [vmem:[%s1931_s5 + $0x8] sm:$0xf] %v215_v2  ;;  %v225_v7 = vld [vmem:[%s1927_s26 + $0x38] sm:$0xf]  ;;  %v227_v8 = vld [vmem:[%s1927_s26 + $0x40] sm:$0xf] }
  0x21   : > { %218 = vst [vmem:[%s1931_s5 + $0xc] sm:$0xf] %v217_v3  ;;  %v229_v9 = vld [vmem:[%s1927_s26 + $0x48] sm:$0xf]  ;;  %v231_v10 = vld [vmem:[%s1927_s26 + $0x50] sm:$0xf] }
  0x22   : > { %220 = vst [vmem:[%s1931_s5 + $0x10] sm:$0xf] %v219_v4  ;;  %v233_v11 = vld [vmem:[%s1927_s26 + $0x58] sm:$0xf]  ;;  %v235_v12 = vld [vmem:[%s1927_s26 + $0x60] sm:$0xf] }
  0x23   : > { %222 = vst [vmem:[%s1931_s5 + $0x14] sm:$0xf] %v221_v5  ;;  %v237_v13 = vld [vmem:[%s1927_s26 + $0x68] sm:$0xf]  ;;  %v239_v14 = vld [vmem:[%s1927_s26 + $0x70] sm:$0xf] }
  0x24   : > { %224 = vst [vmem:[%s1931_s5 + $0x18] sm:$0xf] %v223_v6  ;;  %v241_v15 = vld [vmem:[%s1927_s26 + $0x78] sm:$0xf]  ;;  %v243_v16 = vld [vmem:[%s1927_s26 + $0x80] sm:$0xf] }
  0x25   : > { %226 = vst [vmem:[%s1931_s5 + $0x1c] sm:$0xf] %v225_v7  ;;  %v245_v17 = vld [vmem:[%s1927_s26 + $0x88] sm:$0xf]  ;;  %v247_v18 = vld [vmem:[%s1927_s26 + $0x90] sm:$0xf] }
  0x26   : > { %228 = vst [vmem:[%s1931_s5 + $0x20] sm:$0xf] %v227_v8  ;;  %v249_v19 = vld [vmem:[%s1927_s26 + $0x98] sm:$0xf]  ;;  %v251_v20 = vld [vmem:[%s1927_s26 + $0xa0] sm:$0xf] }
  0x27   : > { %230 = vst [vmem:[%s1931_s5 + $0x24] sm:$0xf] %v229_v9  ;;  %v253_v21 = vld [vmem:[%s1927_s26 + $0xa8] sm:$0xf]  ;;  %v255_v22 = vld [vmem:[%s1927_s26 + $0xb0] sm:$0xf] }
  0x28   : > { %232 = vst [vmem:[%s1931_s5 + $0x28] sm:$0xf] %v231_v10  ;;  %v257_v23 = vld [vmem:[%s1927_s26 + $0xb8] sm:$0xf]  ;;  %v259_v24 = vld [vmem:[%s1927_s26 + $0xc0] sm:$0xf] }
  0x29   : > { %234 = vst [vmem:[%s1931_s5 + $0x2c] sm:$0xf] %v233_v11  ;;  %v261_v25 = vld [vmem:[%s1927_s26 + $0xc8] sm:$0xf]  ;;  %v263_v26 = vld [vmem:[%s1927_s26 + $0xd0] sm:$0xf] }
  0x2a   : > { %236 = vst [vmem:[%s1931_s5 + $0x30] sm:$0xf] %v235_v12  ;;  %v265_v27 = vld [vmem:[%s1927_s26 + $0xd8] sm:$0xf]  ;;  %v267_v28 = vld [vmem:[%s1927_s26 + $0xe0] sm:$0xf] }
  0x2b   : > { %238 = vst [vmem:[%s1931_s5 + $0x34] sm:$0xf] %v237_v13  ;;  %v269_v29 = vld [vmem:[%s1927_s26 + $0xe8] sm:$0xf]  ;;  %v271_v30 = vld [vmem:[%s1927_s26 + $0xf0] sm:$0xf] }
  0x2c   : > { %240 = vst [vmem:[%s1931_s5 + $0x38] sm:$0xf] %v239_v14  ;;  %v273_v31 = vld [vmem:[%s1927_s26 + $0xf8] sm:$0xf] }
  0x2d   : > { %242 = vst [vmem:[%s1931_s5 + $0x3c] sm:$0xf] %v241_v15 }
  0x2e   : > { %244 = vst [vmem:[%s1931_s5 + $0x40] sm:$0xf] %v243_v16 }
  0x2f   : > { %246 = vst [vmem:[%s1931_s5 + $0x44] sm:$0xf] %v245_v17 }
  0x30   : > { %248 = vst [vmem:[%s1931_s5 + $0x48] sm:$0xf] %v247_v18 }
  0x31   : > { %250 = vst [vmem:[%s1931_s5 + $0x4c] sm:$0xf] %v249_v19 }
  0x32   : > { %252 = vst [vmem:[%s1931_s5 + $0x50] sm:$0xf] %v251_v20 }
  0x33   : > { %254 = vst [vmem:[%s1931_s5 + $0x54] sm:$0xf] %v253_v21 }
  0x34   : > { %256 = vst [vmem:[%s1931_s5 + $0x58] sm:$0xf] %v255_v22 }
  0x35   : > { %258 = vst [vmem:[%s1931_s5 + $0x5c] sm:$0xf] %v257_v23 }
  0x36   : > { %260 = vst [vmem:[%s1931_s5 + $0x60] sm:$0xf] %v259_v24 }
  0x37   : > { %262 = vst [vmem:[%s1931_s5 + $0x64] sm:$0xf] %v261_v25 }
  0x38   : > { %264 = vst [vmem:[%s1931_s5 + $0x68] sm:$0xf] %v263_v26 }
  0x39   : > { %266 = vst [vmem:[%s1931_s5 + $0x6c] sm:$0xf] %v265_v27 }
  0x3a   : > { %268 = vst [vmem:[%s1931_s5 + $0x70] sm:$0xf] %v267_v28 }
  0x3b   : > { %270 = vst [vmem:[%s1931_s5 + $0x74] sm:$0xf] %v269_v29 }
  0x3c   : > { %272 = vst [vmem:[%s1931_s5 + $0x78] sm:$0xf] %v271_v30 }
  0x3d   : > { %274 = vst [vmem:[%s1931_s5 + $0x7c] sm:$0xf] %v273_v31 }
  0x3e PF: > { %p1232_p0 = scmp.ge.s32.totalorder %s1799_s24, 1  ;;  %p373_p1 = scmp.lt.s32.totalorder %s1799_s24, 5 }
  0x40   : > { %p374_p2 = pnand %p1232_p0, %p373_p1 }
  0x41   : > { %s380_s6 = sand.u32 (!%p374_p2), 1, %s1775_s18   ;;  %s1235_s18 = sshll.u32 (!%p374_p2), %s1787_s21, 5 }
  0x42   : > { %377 = sbr.rel (%p374_p2) target bundleno = 371 (0x173), region = 73  ;;  %s1233_s8 = sshll.u32 (!%p374_p2), %s380_s6, 7 }
  0x43   : > { %s1998_s9 = scalar_lea.vmem (!%p374_p2), [#allocation2], %s1233_s8  ;;  %p418_p3 = scmp.lt.s32.totalorder (!%p374_p2), %s1235_s18, 63 }
  0x44   : > { %p424_p4 = scmp.lt.s32.totalorder (!%p374_p2), %s1783_s20, 1  ;;  %s414_s26 = sand.u32 (!%p374_p2), 1, %s1767_s16  }
  0x45   : > { %s1234_s5 = sshll.u32 (!%p374_p2), %s414_s26, 7  ;;  %s1098_s25 = scalar_lea.sflag (!%p374_p2), [#allocation4], %s414_s26 }
  0x47   : > { %v1476_v32 = vld [vmem:[%s1998_s9 + $0x38] sm:$0xff]  ;;  %v1475_v34 = vld [vmem:[%s1998_s9 + $0x30] sm:$0xff]  ;;  %v1474_v36 = vld [vmem:[%s1998_s9 + $0x28] sm:$0xff]  ;;  %s2273_s18 = smov (!%p418_p3, %s1235_s18), 63 }
  0x48   : > { %v1484_v33 = vld [vmem:[%s1998_s9 + $0x78] sm:$0xff]  ;;  %751 = vmatpush.bf16.msra.mxu0 %v1476_v32  ;;  %1581 = vmatpush.bf16.msra.mxu2 %v1476_v32  ;;  %v1483_v35 = vld [vmem:[%s1998_s9 + $0x70] sm:$0xff]  ;;  %v1482_v37 = vld [vmem:[%s1998_s9 + $0x68] sm:$0xff]  ;;  %s1436_s13 = sshll.u32 %s2273_s18, 3 }
  0x49   : > { %840 = vmatpush.bf16.msra.mxu1 %v1484_v33  ;;  %1589 = vmatpush.bf16.msra.mxu3 %v1484_v33  ;;  %v1473_v38 = vld [vmem:[%s1998_s9 + $0x20] sm:$0xff]  ;;  %v1472_v40 = vld [vmem:[%s1998_s9 + $0x18] sm:$0xff]  ;;  %v1471_v42 = vld [vmem:[%s1998_s9 + $0x10] sm:$0xff]  ;;  %s2017_s29 = scalar_lea.vmem %s2249_s0, %s1436_s13 }
  0x4a   : > { %v1481_v39 = vld [vmem:[%s1998_s9 + $0x60] sm:$0xff]  ;;  %v1480_v41 = vld [vmem:[%s1998_s9 + $0x58] sm:$0xff]  ;;  %v1479_v43 = vld [vmem:[%s1998_s9 + $0x50] sm:$0xff]  ;;  %s2032_s30 = scalar_select %p424_p4, %s1783_s20, 1 }
  0x4b   : > { %v1470_v44 = vld [vmem:[%s1998_s9 + $0x8] sm:$0xff]  ;;  %v1469_v46 = vld [vmem:[%s1998_s9] sm:$0xff]  ;;  %v1248_v60 = vld [vmem:[%s2017_s29 + $0x10] sm:$0xf] }
  0x4c   : > { %752 = vmatpush.bf16.msra.mxu0 %v1475_v34  ;;  %1582 = vmatpush.bf16.msra.mxu2 %v1475_v34  ;;  %v1478_v45 = vld [vmem:[%s1998_s9 + $0x48] sm:$0xff]  ;;  %v1477_v47 = vld [vmem:[%s1998_s9 + $0x40] sm:$0xff]  ;;  %s426_s6 = scalar_lea.vmem %s2251_s2, %s2032_s30  ;;  %s429_s18 = scalar_lea.vmem %s2252_s3, %s2032_s30  ;;  %v1440_v61 = vld [vmem:[%s2017_s29 + $0x14] sm:$0xf0] }
  0x4d   : > { %841 = vmatpush.bf16.msra.mxu1 %v1483_v35  ;;  %1590 = vmatpush.bf16.msra.mxu3 %v1483_v35  ;;  %v1240_v48 = vld [vmem:[%s2017_s29] sm:$0xf]  ;;  %v1438_v49 = vld [vmem:[%s2017_s29 + $0x4] sm:$0xf0]  ;;  %v1437_v52 = vld [vmem:[%s2017_s29 + $0x4] sm:$0xf]  ;;  %v1249_v4 = vor.u32 %v1440_v61, %v1248_v60 }
  0x4e   : > { %v1304_v50 = vld [vmem:[%s2017_s29 + $0x80] sm:$0xf]  ;;  %v1454_v51 = vld [vmem:[%s2017_s29 + $0x84] sm:$0xf0]  ;;  %v1242_v53 = vld [vmem:[%s2017_s29 + $0x8] sm:$0xf0]  ;;  %v1241_v56 = vor.u32 %v1438_v49, %v1240_v48 }
  0x4f   : > { %v1453_v54 = vld [vmem:[%s2017_s29 + $0x84] sm:$0xf]  ;;  %v1306_v55 = vld [vmem:[%s2017_s29 + $0x88] sm:$0xf0]  ;;  %v1305_v57 = vor.u32 %v1454_v51, %v1304_v50  ;;  %v1245_v58 = vor.u32 %v1437_v52, %v1242_v53  ;;  %v1312_v62 = vld [vmem:[%s2017_s29 + $0x90] sm:$0xf] }
  0x50   : > { %753 = vmatpush.bf16.msra.mxu0 %v1474_v36  ;;  %1583 = vmatpush.bf16.msra.mxu2 %v1474_v36  ;;  %v1309_v59 = vor.u32 %v1453_v54, %v1306_v55  ;;  %v1456_v63 = vld [vmem:[%s2017_s29 + $0x94] sm:$0xf0]  ;;  %v1439_v0 = vld [vmem:[%s2017_s29 + $0x14] sm:$0xf]  ;;  %v1250_v1 = vld [vmem:[%s2017_s29 + $0x18] sm:$0xf0] }
  0x51   : > { %842 = vmatpush.bf16.msra.mxu1 %v1482_v37  ;;  %1591 = vmatpush.bf16.msra.mxu3 %v1482_v37  ;;  %v1455_v2 = vld [vmem:[%s2017_s29 + $0x94] sm:$0xf]  ;;  %v1314_v3 = vld [vmem:[%s2017_s29 + $0x98] sm:$0xf0]  ;;  %v1313_v5 = vor.u32 %v1456_v63, %v1312_v62  ;;  %v1253_v6 = vor.u32 %v1439_v0, %v1250_v1  ;;  %v1256_v8 = vld [vmem:[%s2017_s29 + $0x20] sm:$0xf] }
  0x52   : > { %v1317_v7 = vor.u32 %v1455_v2, %v1314_v3  ;;  %v1442_v9 = vld [vmem:[%s2017_s29 + $0x24] sm:$0xf0]  ;;  %v1320_v10 = vld [vmem:[%s2017_s29 + $0xa0] sm:$0xf]  ;;  %v1441_v12 = vld [vmem:[%s2017_s29 + $0x24] sm:$0xf] }
  0x53   : > { %v1458_v11 = vld [vmem:[%s2017_s29 + $0xa4] sm:$0xf0]  ;;  %v1258_v13 = vld [vmem:[%s2017_s29 + $0x28] sm:$0xf0]  ;;  %v1457_v14 = vld [vmem:[%s2017_s29 + $0xa4] sm:$0xf]  ;;  %v1257_v16 = vor.u32 %v1442_v9, %v1256_v8 }
  0x54   : > { %754 = vmatpush.bf16.msra.mxu0 %v1473_v38  ;;  %1584 = vmatpush.bf16.msra.mxu2 %v1473_v38  ;;  %v1322_v15 = vld [vmem:[%s2017_s29 + $0xa8] sm:$0xf0]  ;;  %v1321_v17 = vor.u32 %v1458_v11, %v1320_v10  ;;  %v1261_v18 = vor.u32 %v1441_v12, %v1258_v13  ;;  %v1264_v20 = vld [vmem:[%s2017_s29 + $0x30] sm:$0xf]  ;;  %v1444_v21 = vld [vmem:[%s2017_s29 + $0x34] sm:$0xf0] }
  0x55   : > { %843 = vmatpush.bf16.msra.mxu1 %v1481_v39  ;;  %1592 = vmatpush.bf16.msra.mxu3 %v1481_v39  ;;  %v1325_v19 = vor.u32 %v1457_v14, %v1322_v15  ;;  %v1328_v22 = vld [vmem:[%s2017_s29 + $0xb0] sm:$0xf]  ;;  %v1460_v23 = vld [vmem:[%s2017_s29 + $0xb4] sm:$0xf0]  ;;  %v1443_v24 = vld [vmem:[%s2017_s29 + $0x34] sm:$0xf]  ;;  %v1265_v28 = vor.u32 %v1444_v21, %v1264_v20 }
  0x56   : > { %v1266_v25 = vld [vmem:[%s2017_s29 + $0x38] sm:$0xf0]  ;;  %v1459_v26 = vld [vmem:[%s2017_s29 + $0xb4] sm:$0xf]  ;;  %v1329_v29 = vor.u32 %v1460_v23, %v1328_v22  ;;  %v1272_v32 = vld [vmem:[%s2017_s29 + $0x40] sm:$0xf] }
  0x57   : > { %v1330_v27 = vld [vmem:[%s2017_s29 + $0xb8] sm:$0xf0]  ;;  %v1269_v30 = vor.u32 %v1443_v24, %v1266_v25  ;;  %v1446_v33 = vld [vmem:[%s2017_s29 + $0x44] sm:$0xf0]  ;;  %v1336_v34 = vld [vmem:[%s2017_s29 + $0xc0] sm:$0xf] }
  0x58   : > { %755 = vmatpush.bf16.msra.mxu0 %v1472_v40  ;;  %1585 = vmatpush.bf16.msra.mxu2 %v1472_v40  ;;  %v1333_v31 = vor.u32 %v1459_v26, %v1330_v27  ;;  %v1462_v35 = vld [vmem:[%s2017_s29 + $0xc4] sm:$0xf0]  ;;  %v1445_v36 = vld [vmem:[%s2017_s29 + $0x44] sm:$0xf]  ;;  %v1274_v37 = vld [vmem:[%s2017_s29 + $0x48] sm:$0xf0]  ;;  %v1273_v40 = vor.u32 %v1446_v33, %v1272_v32 }
  0x59   : > { %844 = vmatpush.bf16.msra.mxu1 %v1480_v41  ;;  %1593 = vmatpush.bf16.msra.mxu3 %v1480_v41  ;;  %v1461_v38 = vld [vmem:[%s2017_s29 + $0xc4] sm:$0xf]  ;;  %v1338_v39 = vld [vmem:[%s2017_s29 + $0xc8] sm:$0xf0]  ;;  %v1337_v41 = vor.u32 %v1462_v35, %v1336_v34  ;;  %v1447_v48 = vld [vmem:[%s2017_s29 + $0x54] sm:$0xf] }
  0x5a   : > { %v1282_v49 = vld [vmem:[%s2017_s29 + $0x58] sm:$0xf0]  ;;  %v1463_v50 = vld [vmem:[%s2017_s29 + $0xd4] sm:$0xf]  ;;  %v1449_v60 = vld [vmem:[%s2017_s29 + $0x64] sm:$0xf] }
  0x5b   : > { %v1346_v51 = vld [vmem:[%s2017_s29 + $0xd8] sm:$0xf0]  ;;  %v1285_v54 = vor.u32 %v1447_v48, %v1282_v49  ;;  %v1290_v61 = vld [vmem:[%s2017_s29 + $0x68] sm:$0xf0]  ;;  %v1465_v62 = vld [vmem:[%s2017_s29 + $0xe4] sm:$0xf] }
  0x5c   : > { %756 = vmatpush.bf16.msra.mxu0 %v1471_v42  ;;  %1586 = vmatpush.bf16.msra.mxu2 %v1471_v42  ;;  %v1277_v42 = vor.u32 %v1445_v36, %v1274_v37  ;;  %v1349_v55 = vor.u32 %v1463_v50, %v1346_v51  ;;  %v1354_v63 = vld [vmem:[%s2017_s29 + $0xe8] sm:$0xf0]  ;;  %v1293_v2 = vor.u32 %v1449_v60, %v1290_v61  ;;  %v1451_v8 = vld [vmem:[%s2017_s29 + $0x74] sm:$0xf]  ;;  %v1298_v9 = vld [vmem:[%s2017_s29 + $0x78] sm:$0xf0] }
  0x5d   : > { %845 = vmatpush.bf16.msra.mxu1 %v1479_v43  ;;  %1594 = vmatpush.bf16.msra.mxu3 %v1479_v43  ;;  %v1341_v43 = vor.u32 %v1461_v38, %v1338_v39  ;;  %v1357_v3 = vor.u32 %v1465_v62, %v1354_v63  ;;  %v1467_v10 = vld [vmem:[%s2017_s29 + $0xf4] sm:$0xf]  ;;  %v1362_v11 = vld [vmem:[%s2017_s29 + $0xf8] sm:$0xf0]  ;;  %v1301_v14 = vor.u32 %v1451_v8, %v1298_v9  ;;  %v2111_v23 = vld [vmem:[%s429_s18] ss:$0 sm:$0xff] }
  0x5e   : > { %v1365_v15 = vor.u32 %v1467_v10, %v1362_v11  ;;  %s2122_s30 = scalar_lea.vmem [#allocation3], %s1234_s5 }
  0x5f   : > { %s1112_s13 = sshll.u32 %s2122_s30, 4  ;;  %s1113_s13 = int_to_ptr.vmem [resolvable:$true] %s1112_s13 }
  0x60   : > { %757 = vmatpush.bf16.msra.mxu0 %v1470_v44  ;;  %1587 = vmatpush.bf16.msra.mxu2 %v1470_v44  ;;  %v1280_v44 = vld [vmem:[%s2017_s29 + $0x50] sm:$0xf] }
  0x61   : > { %846 = vmatpush.bf16.msra.mxu1 %v1478_v45  ;;  %1595 = vmatpush.bf16.msra.mxu3 %v1478_v45  ;;  %v1448_v45 = vld [vmem:[%s2017_s29 + $0x54] sm:$0xf0] }
  0x62   : > { %v1281_v52 = vor.u32 %v1448_v45, %v1280_v44 }
  0x64   : > { %758 = vmatpush.bf16.msra.mxu0 %v1469_v46  ;;  %1588 = vmatpush.bf16.msra.mxu2 %v1469_v46  ;;  %v1344_v46 = vld [vmem:[%s2017_s29 + $0xd0] sm:$0xf] }
  0x65   : > { %847 = vmatpush.bf16.msra.mxu1 %v1477_v47  ;;  %1596 = vmatpush.bf16.msra.mxu3 %v1477_v47  ;;  %v1464_v47 = vld [vmem:[%s2017_s29 + $0xd4] sm:$0xf0] }
  0x66   : > { %v1345_v53 = vor.u32 %v1464_v47, %v1344_v46 }
  0x67   : > { %759 = vmatmul.bf16.vlgmr.msra.gmra.mxu0 %v1241_v56  ;;  %799 = vmatmul.bf16.vlgmr.msra.gmra.mxu2 %v1305_v57  ;;  %v1288_v56 = vld [vmem:[%s2017_s29 + $0x60] sm:$0xf]  ;;  %v1450_v57 = vld [vmem:[%s2017_s29 + $0x64] sm:$0xf0] }
  0x68   : > { %848 = vmatmul.bf16.vlgmr.msra.gmra.mxu1 %v1245_v58  ;;  %888 = vmatmul.bf16.vlgmr.msra.gmra.mxu3 %v1309_v59  ;;  %v1352_v58 = vld [vmem:[%s2017_s29 + $0xe0] sm:$0xf]  ;;  %v1466_v59 = vld [vmem:[%s2017_s29 + $0xe4] sm:$0xf0]  ;;  %v1289_v0 = vor.u32 %v1450_v57, %v1288_v56 }
  0x69   : > { %v1353_v1 = vor.u32 %v1466_v59, %v1352_v58 }
  0x77   : > { %764 = vmatmul.bf16.gmra.mxu0 %v1249_v4  ;;  %804 = vmatmul.bf16.gmra.mxu2 %v1313_v5  ;;  %v1296_v4 = vld [vmem:[%s2017_s29 + $0x70] sm:$0xf]  ;;  %v1452_v5 = vld [vmem:[%s2017_s29 + $0x74] sm:$0xf0] }
  0x78   : > { %853 = vmatmul.bf16.gmra.mxu1 %v1253_v6  ;;  %893 = vmatmul.bf16.gmra.mxu3 %v1317_v7  ;;  %v1360_v6 = vld [vmem:[%s2017_s29 + $0xf0] sm:$0xf]  ;;  %v1468_v7 = vld [vmem:[%s2017_s29 + $0xf4] sm:$0xf0]  ;;  %v1297_v12 = vor.u32 %v1452_v5, %v1296_v4 }
  0x79   : > { %v1361_v13 = vor.u32 %v1468_v7, %v1360_v6 }
  0x87   : > { %769 = vmatmul.bf16.gmra.mxu0 %v1257_v16  ;;  %809 = vmatmul.bf16.gmra.mxu2 %v1321_v17 }
  0x88   : > { %858 = vmatmul.bf16.gmra.mxu1 %v1261_v18  ;;  %898 = vmatmul.bf16.gmra.mxu3 %v1325_v19  ;;  %v2103_v19 = vld [vmem:[%s426_s6] ss:$0 sm:$0xff]  ;;  %s1485_s6 = sshll.u32 %s1787_s21, 6 }
  0x89   : > { %s1109_s8 = sadd.s32 %s1783_s20, %s1485_s6 }
  0x8a   : > { %s1433_s9 = sshll.u32 %s1109_s8, 2 }
  0x8b   : > { %s1111_s20 = scalar_lea.hbm %s2253_s4, %s1433_s9  ;;  %s1709_s9 = scalar_lea.hbm %s2253_s4, 512 }
  0x8c   : > { %s1114_s14 = sshll.u32 %s1111_s20, 4  ;;  %s1115_s14 = int_to_ptr.hbm [resolvable:$true] %s1114_s14 }
  0x8d   : > { %s1703_s29 = sshra.s32 %s1115_s14, 4  ;;  %s1704_s29 = int_to_ptr.hbm [resolvable:$true] %s1703_s29 }
  0x8e   : > { %s1705_s5 = scalar_lea.hbm %s1704_s29, 128  ;;  %p1710_p8 = scmp.lt.s32.totalorder %s1704_s29, %s2253_s4 }
  0x8f   : > { %p1706_p5 = scmp.ne.s32.totalorder %s1704_s29, %s1705_s5  ;;  %p1711_p9 = scmp.lt.s32.totalorder %s1709_s9, %s1705_s5 }
  0x91   : > { %p1707_p6 = pnand %p1706_p5, %p1908_p10  ;;  %p1712_p11 = por %p1711_p9, %p1710_p8 }
  0x93   : > { %p1708_p7 = pneg %p1707_p6 }
  0x95   : > { %p1713_p13 = pnand %p1712_p11, %p1708_p7 }
  0x97   : > { %774 = vmatmul.bf16.gmra.mxu0 %v1265_v28  ;;  %814 = vmatmul.bf16.gmra.mxu2 %v1329_v29 }
  0x98   : > { %863 = vmatmul.bf16.gmra.mxu1 %v1269_v30  ;;  %903 = vmatmul.bf16.gmra.mxu3 %v1333_v31 }
  0xa7   : > { %779 = vmatmul.bf16.gmra.mxu0 %v1273_v40  ;;  %819 = vmatmul.bf16.gmra.mxu2 %v1337_v41 }
  0xa8   : > { %868 = vmatmul.bf16.gmra.mxu1 %v1277_v42  ;;  %908 = vmatmul.bf16.gmra.mxu3 %v1341_v43 }
  0xb7   : > { %784 = vmatmul.bf16.gmra.mxu0 %v1281_v52  ;;  %824 = vmatmul.bf16.gmra.mxu2 %v1345_v53 }
  0xb8   : > { %873 = vmatmul.bf16.gmra.mxu1 %v1285_v54  ;;  %913 = vmatmul.bf16.gmra.mxu3 %v1349_v55 }
  0xc7   : > { %789 = vmatmul.bf16.gmra.mxu0 %v1289_v0  ;;  %829 = vmatmul.bf16.gmra.mxu2 %v1353_v1 }
  0xc8   : > { %878 = vmatmul.bf16.gmra.mxu1 %v1293_v2  ;;  %918 = vmatmul.bf16.gmra.mxu3 %v1357_v3 }
  0xd7   : > { %794 = vmatmul.bf16.gmra.mxu0 %v1297_v12  ;;  %834 = vmatmul.bf16.gmra.mxu2 %v1361_v13 }
  0xd8   : > { %883 = vmatmul.bf16.gmra.mxu1 %v1301_v14  ;;  %923 = vmatmul.bf16.gmra.mxu3 %v1365_v15 }
  0xe4   : > { %v760_v16 = vpop.f32.mrf.mxu0 }
  0xe5   : > { %v849_v17 = vpop.f32.mrf.mxu1 }
  0xe6   : > { %v850_v18 = vadd.f32 %v849_v17, %v760_v16 }
  0xe8   : > { %v933_v22 = vmul.f32 %v2103_v19, %v850_v18 }
  0xea   : > { %v800_v20 = vpop.f32.mrf.mxu2  ;;  %v969_v28 = vadd.f32 %v2111_v23, %v933_v22 }
  0xeb   : > { %v889_v21 = vpop.f32.mrf.mxu3 }
  0xec   : > { %v762_v24 = vpop.f32.mrf.mxu0  ;;  %v890_v26 = vadd.f32 %v889_v21, %v800_v20  ;;  %v1001_v34 = vmax.f32 %v969_v28, 0.0 }
  0xed   : > { %v851_v25 = vpop.f32.mrf.mxu1 }
  0xee   : > { %v852_v27 = vadd.f32 %v851_v25, %v762_v24  ;;  %v949_v30 = vmul.f32 %v2103_v19, %v890_v26 }
  0xf0   : > { %v934_v29 = vmul.f32 %v2103_v19, %v852_v27  ;;  %v985_v39 = vadd.f32 %v2111_v23, %v949_v30 }
  0xf2   : > { %v970_v31 = vadd.f32 %v2111_v23, %v934_v29  ;;  %v802_v32 = vpop.f32.mrf.mxu2  ;;  %v1017_v44 = vmax.f32 %v985_v39, 0.0 }
  0xf3   : > { %v891_v33 = vpop.f32.mrf.mxu3 }
  0xf4   : > { %v1002_v35 = vmax.f32 %v970_v31, 0.0  ;;  %v892_v36 = vadd.f32 %v891_v33, %v802_v32  ;;  %v765_v37 = vpop.f32.mrf.mxu0 }
  0xf5   : > { %v854_v38 = vpop.f32.mrf.mxu1 }
  0xf6   : > { %v1489_v40 = vpack.c.bf16 %v1002_v35, %v1001_v34  ;;  %v950_v41 = vmul.f32 %v2103_v19, %v892_v36  ;;  %v855_v43 = vadd.f32 %v854_v38, %v765_v37 }
  0xf8   : > { %1490 = vst [vmem:[%s2122_s30] sm:$0xff] %v1489_v40   ;;  %v986_v42 = vadd.f32 %v2111_v23, %v950_v41  ;;  %v935_v49 = vmul.f32 %v2103_v19, %v855_v43 }
  0xfa   : > { %v1018_v45 = vmax.f32 %v986_v42, 0.0  ;;  %v805_v46 = vpop.f32.mrf.mxu2  ;;  %v971_v54 = vadd.f32 %v2111_v23, %v935_v49 }
  0xfb   : > { %v894_v47 = vpop.f32.mrf.mxu3 }
  0xfc   : > { %v1529_v48 = vpack.c.bf16 %v1018_v45, %v1017_v44  ;;  %v767_v50 = vpop.f32.mrf.mxu0  ;;  %v895_v52 = vadd.f32 %v894_v47, %v805_v46  ;;  %v1003_v60 = vmax.f32 %v971_v54, 0.0 }
  0xfd   : > { %v856_v51 = vpop.f32.mrf.mxu1 }
  0xfe   : > { %1573 = vst [vmem:[%s2122_s30 + $0x40] sm:$0xff] %v1529_v48   ;;  %v857_v53 = vadd.f32 %v856_v51, %v767_v50  ;;  %v951_v56 = vmul.f32 %v2103_v19, %v895_v52 }
 0x100   : > { %v936_v55 = vmul.f32 %v2103_v19, %v857_v53  ;;  %v987_v1 = vadd.f32 %v2111_v23, %v951_v56 }
 0x102   : > { %v972_v57 = vadd.f32 %v2111_v23, %v936_v55  ;;  %v807_v58 = vpop.f32.mrf.mxu2  ;;  %v1019_v6 = vmax.f32 %v987_v1, 0.0 }
 0x103   : > { %v896_v59 = vpop.f32.mrf.mxu3 }
 0x104   : > { %v1004_v61 = vmax.f32 %v972_v57, 0.0  ;;  %v897_v62 = vadd.f32 %v896_v59, %v807_v58  ;;  %v770_v63 = vpop.f32.mrf.mxu0 }
 0x105   : > { %v859_v0 = vpop.f32.mrf.mxu1 }
 0x106   : > { %v1494_v2 = vpack.c.bf16 %v1004_v61, %v1003_v60  ;;  %v952_v3 = vmul.f32 %v2103_v19, %v897_v62  ;;  %v860_v5 = vadd.f32 %v859_v0, %v770_v63 }
 0x108   : > { %1566 = vst [vmem:[%s2122_s30 + $0x8] sm:$0xff] %v1494_v2   ;;  %v988_v4 = vadd.f32 %v2111_v23, %v952_v3  ;;  %v937_v11 = vmul.f32 %v2103_v19, %v860_v5 }
 0x10a   : > { %v1020_v7 = vmax.f32 %v988_v4, 0.0  ;;  %v810_v8 = vpop.f32.mrf.mxu2  ;;  %v973_v16 = vadd.f32 %v2111_v23, %v937_v11 }
 0x10b   : > { %v899_v9 = vpop.f32.mrf.mxu3 }
 0x10c   : > { %v1534_v10 = vpack.c.bf16 %v1020_v7, %v1019_v6  ;;  %v772_v12 = vpop.f32.mrf.mxu0  ;;  %v900_v14 = vadd.f32 %v899_v9, %v810_v8  ;;  %v1005_v24 = vmax.f32 %v973_v16, 0.0 }
 0x10d   : > { %v861_v13 = vpop.f32.mrf.mxu1 }
 0x10e   : > { %1574 = vst [vmem:[%s2122_s30 + $0x48] sm:$0xff] %v1534_v10   ;;  %v862_v15 = vadd.f32 %v861_v13, %v772_v12  ;;  %v953_v18 = vmul.f32 %v2103_v19, %v900_v14 }
 0x110   : > { %v938_v17 = vmul.f32 %v2103_v19, %v862_v15  ;;  %v989_v29 = vadd.f32 %v2111_v23, %v953_v18 }
 0x112   : > { %v974_v20 = vadd.f32 %v2111_v23, %v938_v17  ;;  %v812_v21 = vpop.f32.mrf.mxu2  ;;  %v1021_v34 = vmax.f32 %v989_v29, 0.0 }
 0x113   : > { %v901_v22 = vpop.f32.mrf.mxu3 }
 0x114   : > { %v1006_v25 = vmax.f32 %v974_v20, 0.0  ;;  %v902_v26 = vadd.f32 %v901_v22, %v812_v21  ;;  %v775_v27 = vpop.f32.mrf.mxu0 }
 0x115   : > { %v864_v28 = vpop.f32.mrf.mxu1 }
 0x116   : > { %v1499_v30 = vpack.c.bf16 %v1006_v25, %v1005_v24  ;;  %v954_v31 = vmul.f32 %v2103_v19, %v902_v26  ;;  %v865_v33 = vadd.f32 %v864_v28, %v775_v27 }
 0x118   : > { %1567 = vst [vmem:[%s2122_s30 + $0x10] sm:$0xff] %v1499_v30   ;;  %v990_v32 = vadd.f32 %v2111_v23, %v954_v31  ;;  %v939_v39 = vmul.f32 %v2103_v19, %v865_v33 }
 0x11a   : > { %v1022_v35 = vmax.f32 %v990_v32, 0.0  ;;  %v815_v36 = vpop.f32.mrf.mxu2  ;;  %v975_v44 = vadd.f32 %v2111_v23, %v939_v39 }
 0x11b   : > { %v904_v37 = vpop.f32.mrf.mxu3 }
 0x11c   : > { %v1539_v38 = vpack.c.bf16 %v1022_v35, %v1021_v34  ;;  %v777_v40 = vpop.f32.mrf.mxu0  ;;  %v905_v42 = vadd.f32 %v904_v37, %v815_v36  ;;  %v1007_v50 = vmax.f32 %v975_v44, 0.0 }
 0x11d   : > { %v866_v41 = vpop.f32.mrf.mxu1 }
 0x11e   : > { %1575 = vst [vmem:[%s2122_s30 + $0x50] sm:$0xff] %v1539_v38   ;;  %v867_v43 = vadd.f32 %v866_v41, %v777_v40  ;;  %v955_v46 = vmul.f32 %v2103_v19, %v905_v42 }
 0x120   : > { %v940_v45 = vmul.f32 %v2103_v19, %v867_v43  ;;  %v991_v55 = vadd.f32 %v2111_v23, %v955_v46 }
 0x122   : > { %v976_v47 = vadd.f32 %v2111_v23, %v940_v45  ;;  %v817_v48 = vpop.f32.mrf.mxu2  ;;  %v1023_v60 = vmax.f32 %v991_v55, 0.0 }
 0x123   : > { %v906_v49 = vpop.f32.mrf.mxu3 }
 0x124   : > { %v1008_v51 = vmax.f32 %v976_v47, 0.0  ;;  %v907_v52 = vadd.f32 %v906_v49, %v817_v48  ;;  %v780_v53 = vpop.f32.mrf.mxu0 }
 0x125   : > { %v869_v54 = vpop.f32.mrf.mxu1 }
 0x126   : > { %v1504_v56 = vpack.c.bf16 %v1008_v51, %v1007_v50  ;;  %v956_v57 = vmul.f32 %v2103_v19, %v907_v52  ;;  %v870_v59 = vadd.f32 %v869_v54, %v780_v53 }
 0x128   : > { %1568 = vst [vmem:[%s2122_s30 + $0x18] sm:$0xff] %v1504_v56   ;;  %v992_v58 = vadd.f32 %v2111_v23, %v956_v57  ;;  %v941_v1 = vmul.f32 %v2103_v19, %v870_v59 }
 0x12a   : > { %v1024_v61 = vmax.f32 %v992_v58, 0.0  ;;  %v820_v62 = vpop.f32.mrf.mxu2  ;;  %v977_v6 = vadd.f32 %v2111_v23, %v941_v1 }
 0x12b   : > { %v909_v63 = vpop.f32.mrf.mxu3 }
 0x12c   : > { %v1544_v0 = vpack.c.bf16 %v1024_v61, %v1023_v60  ;;  %v782_v2 = vpop.f32.mrf.mxu0  ;;  %v910_v4 = vadd.f32 %v909_v63, %v820_v62  ;;  %v1009_v12 = vmax.f32 %v977_v6, 0.0 }
 0x12d   : > { %v871_v3 = vpop.f32.mrf.mxu1 }
 0x12e   : > { %1576 = vst [vmem:[%s2122_s30 + $0x58] sm:$0xff] %v1544_v0   ;;  %v872_v5 = vadd.f32 %v871_v3, %v782_v2  ;;  %v957_v8 = vmul.f32 %v2103_v19, %v910_v4 }
 0x130   : > { %v942_v7 = vmul.f32 %v2103_v19, %v872_v5  ;;  %v993_v17 = vadd.f32 %v2111_v23, %v957_v8 }
 0x132   : > { %v978_v9 = vadd.f32 %v2111_v23, %v942_v7  ;;  %v822_v10 = vpop.f32.mrf.mxu2  ;;  %v1025_v24 = vmax.f32 %v993_v17, 0.0 }
 0x133   : > { %v911_v11 = vpop.f32.mrf.mxu3 }
 0x134   : > { %v1010_v13 = vmax.f32 %v978_v9, 0.0  ;;  %v912_v14 = vadd.f32 %v911_v11, %v822_v10  ;;  %v785_v15 = vpop.f32.mrf.mxu0 }
 0x135   : > { %v874_v16 = vpop.f32.mrf.mxu1 }
 0x136   : > { %v1509_v18 = vpack.c.bf16 %v1010_v13, %v1009_v12  ;;  %v958_v20 = vmul.f32 %v2103_v19, %v912_v14  ;;  %v875_v22 = vadd.f32 %v874_v16, %v785_v15 }
 0x138   : > { %1569 = vst [vmem:[%s2122_s30 + $0x20] sm:$0xff] %v1509_v18   ;;  %v994_v21 = vadd.f32 %v2111_v23, %v958_v20  ;;  %v943_v29 = vmul.f32 %v2103_v19, %v875_v22 }
 0x13a   : > { %v1026_v25 = vmax.f32 %v994_v21, 0.0  ;;  %v825_v26 = vpop.f32.mrf.mxu2  ;;  %v979_v34 = vadd.f32 %v2111_v23, %v943_v29 }
 0x13b   : > { %v914_v27 = vpop.f32.mrf.mxu3 }
 0x13c   : > { %v1549_v28 = vpack.c.bf16 %v1026_v25, %v1025_v24  ;;  %v787_v30 = vpop.f32.mrf.mxu0  ;;  %v915_v32 = vadd.f32 %v914_v27, %v825_v26  ;;  %v1011_v40 = vmax.f32 %v979_v34, 0.0 }
 0x13d   : > { %v876_v31 = vpop.f32.mrf.mxu1 }
 0x13e   : > { %1577 = vst [vmem:[%s2122_s30 + $0x60] sm:$0xff] %v1549_v28   ;;  %v877_v33 = vadd.f32 %v876_v31, %v787_v30  ;;  %v959_v36 = vmul.f32 %v2103_v19, %v915_v32 }
 0x140   : > { %v944_v35 = vmul.f32 %v2103_v19, %v877_v33  ;;  %v995_v45 = vadd.f32 %v2111_v23, %v959_v36 }
 0x142   : > { %v980_v37 = vadd.f32 %v2111_v23, %v944_v35  ;;  %v827_v38 = vpop.f32.mrf.mxu2  ;;  %v1027_v50 = vmax.f32 %v995_v45, 0.0 }
 0x143   : > { %v916_v39 = vpop.f32.mrf.mxu3 }
 0x144   : > { %v1012_v41 = vmax.f32 %v980_v37, 0.0  ;;  %v917_v42 = vadd.f32 %v916_v39, %v827_v38  ;;  %v790_v43 = vpop.f32.mrf.mxu0 }
 0x145   : > { %v879_v44 = vpop.f32.mrf.mxu1 }
 0x146   : > { %v1514_v46 = vpack.c.bf16 %v1012_v41, %v1011_v40  ;;  %v960_v47 = vmul.f32 %v2103_v19, %v917_v42  ;;  %v880_v49 = vadd.f32 %v879_v44, %v790_v43 }
 0x148   : > { %1570 = vst [vmem:[%s2122_s30 + $0x28] sm:$0xff] %v1514_v46   ;;  %v996_v48 = vadd.f32 %v2111_v23, %v960_v47  ;;  %v945_v55 = vmul.f32 %v2103_v19, %v880_v49 }
 0x14a   : > { %v1028_v51 = vmax.f32 %v996_v48, 0.0  ;;  %v830_v52 = vpop.f32.mrf.mxu2  ;;  %v981_v60 = vadd.f32 %v2111_v23, %v945_v55 }
 0x14b   : > { %v919_v53 = vpop.f32.mrf.mxu3 }
 0x14c   : > { %v1554_v54 = vpack.c.bf16 %v1028_v51, %v1027_v50  ;;  %v792_v56 = vpop.f32.mrf.mxu0  ;;  %v920_v58 = vadd.f32 %v919_v53, %v830_v52  ;;  %v1013_v2 = vmax.f32 %v981_v60, 0.0 }
 0x14d   : > { %v881_v57 = vpop.f32.mrf.mxu1 }
 0x14e   : > { %1578 = vst [vmem:[%s2122_s30 + $0x68] sm:$0xff] %v1554_v54   ;;  %v882_v59 = vadd.f32 %v881_v57, %v792_v56  ;;  %v961_v62 = vmul.f32 %v2103_v19, %v920_v58 }
 0x150   : > { %v946_v61 = vmul.f32 %v2103_v19, %v882_v59  ;;  %v997_v7 = vadd.f32 %v2111_v23, %v961_v62 }
 0x152   : > { %v982_v63 = vadd.f32 %v2111_v23, %v946_v61  ;;  %v832_v0 = vpop.f32.mrf.mxu2  ;;  %v1029_v12 = vmax.f32 %v997_v7, 0.0 }
 0x153   : > { %v921_v1 = vpop.f32.mrf.mxu3 }
 0x154   : > { %v1014_v3 = vmax.f32 %v982_v63, 0.0  ;;  %v922_v4 = vadd.f32 %v921_v1, %v832_v0  ;;  %v795_v5 = vpop.f32.mrf.mxu0 }
 0x155   : > { %v884_v6 = vpop.f32.mrf.mxu1 }
 0x156   : > { %v1519_v8 = vpack.c.bf16 %v1014_v3, %v1013_v2  ;;  %v962_v9 = vmul.f32 %v2103_v19, %v922_v4  ;;  %v885_v11 = vadd.f32 %v884_v6, %v795_v5 }
 0x158   : > { %1571 = vst [vmem:[%s2122_s30 + $0x30] sm:$0xff] %v1519_v8   ;;  %v998_v10 = vadd.f32 %v2111_v23, %v962_v9  ;;  %v947_v17 = vmul.f32 %v2103_v19, %v885_v11 }
 0x15a   : > { %v1030_v13 = vmax.f32 %v998_v10, 0.0  ;;  %v835_v14 = vpop.f32.mrf.mxu2  ;;  %v983_v24 = vadd.f32 %v2111_v23, %v947_v17 }
 0x15b   : > { %v924_v15 = vpop.f32.mrf.mxu3 }
 0x15c   : > { %v1559_v16 = vpack.c.bf16 %v1030_v13, %v1029_v12  ;;  %v797_v18 = vpop.f32.mrf.mxu0  ;;  %v925_v21 = vadd.f32 %v924_v15, %v835_v14  ;;  %v1015_v30 = vmax.f32 %v983_v24, 0.0 }
 0x15d   : > { %v886_v20 = vpop.f32.mrf.mxu1 }
 0x15e   : > { %1579 = vst [vmem:[%s2122_s30 + $0x70] sm:$0xff] %v1559_v16   ;;  %v887_v22 = vadd.f32 %v886_v20, %v797_v18  ;;  %v963_v26 = vmul.f32 %v2103_v19, %v925_v21 }
 0x160   : > { %v948_v25 = vmul.f32 %v2103_v19, %v887_v22  ;;  %v999_v33 = vadd.f32 %v2111_v23, %v963_v26 }
 0x162   : > { %v984_v27 = vadd.f32 %v2111_v23, %v948_v25  ;;  %v837_v28 = vpop.f32.mrf.mxu2  ;;  %v1031_v37 = vmax.f32 %v999_v33, 0.0 }
 0x163   : > { %v926_v29 = vpop.f32.mrf.mxu3 }
 0x164   : > { %v1016_v31 = vmax.f32 %v984_v27, 0.0  ;;  %v927_v32 = vadd.f32 %v926_v29, %v837_v28 }
 0x166   : > { %v1524_v34 = vpack.c.bf16 %v1016_v31, %v1015_v30  ;;  %v964_v35 = vmul.f32 %v2103_v19, %v927_v32 }
 0x168   : > { %1572 = vst [vmem:[%s2122_s30 + $0x38] sm:$0xff] %v1524_v34   ;;  %v1000_v36 = vadd.f32 %v2111_v23, %v964_v35 }
 0x16a   : > { %v1032_v38 = vmax.f32 %v1000_v36, 0.0 }
 0x16c   : > { %v1564_v39 = vpack.c.bf16 %v1032_v38, %v1031_v37 }
 0x16e   : > { %1580 = vst [vmem:[%s2122_s30 + $0x78] sm:$0xff] %v1564_v39  }
 0x16f   : > { %1716 = shalt.err (!%p1713_p13)
}
 0x170   : > { %s1801_s26 = smov 64   ;;  %s1802_s30 = smov 128  }
 0x171   : > { %s1803_s20 = smov 4  }
 0x172   : > { %1597 = dma.vmem_to_hbm [thread:$0]  (%p1908_p10), %s1113_s13, 2048, %s1115_s14, %s1098_s25, %s1801_s26, %s1802_s30, %s1803_s20  }
 0x173 PF: > { %p1603_p0 = scmp.ge.s32.totalorder %s1799_s24, 2  ;;  %s1129_s6 = sand.u32 1, %s1763_s15  }
 0x174   : > { %s1130_s29 = scalar_lea.sflag [#allocation4], %s1129_s6 }
 0x175   : > { %p1600_p1 = pnand %p1603_p0, %p1915_p12 }
 0x177   : > { %p1601_p2 = pneg %p1600_p1 }
 0x179   : > { %1758 = dma.done.wait (%p1601_p2), %s1130_s29, 2048  }
 0x17a   : > { %1760 = vsyncadd (%p1601_p2), %s1130_s29, 4294965248  ;;  %s17_s24 = sadd.s32 1, %s1799_s24   ;;  %s2257_s15 = smov %s1767_s16 }
 0x17b   : > { %p14_p3 = scmp.ge.s32.totalorder %s17_s24, 6   ;;  %s2258_s16 = smov %s1771_s17 }
 0x17c   : > { %s2259_s17 = smov %s1913_s11  ;;  %s2260_s18 = smov %s1779_s19 }
 0x17d   : > { %s2261_s19 = smov %s1902_s7  ;;  %s2262_s20 = smov %s1791_s22 }
 0x17e   : > { %s2263_s21 = smov %s1795_s23  ;;  %s2264_s22 = smov %s2267_s27 }
 0x17f   : > { %s2265_s23 = smov %s2271_s28  ;;  %16 = sbr.rel (!%p14_p3) target bundleno = 6 (0x6), region = 126 }
 0x184   :  { %1136 = vsyncpa [#allocation4], 1 }
 0x185   :  { %1138 = vsyncpa [#allocation4 + $0x1], 1 }

</bundles_post_ra>
